<compile_context>
chip_gen: v6e
topology: v6e:2x2x1
jax: 0.10.0
libtpu: 0.0.40
codegen_flags: <defaults>
</compile_context>

<pallas_src>
import functools

import jax
import jax.numpy as jnp
from jax.experimental import pallas as pl
from jax.experimental.pallas import tpu as pltpu  # noqa: F401  (TPU backend)

LANE = 128  # vreg lane width; all small dims are padded up to this.


def emnet_kernel(x_ref, p_ref, out_ref, *, hidden_dim):
    # p_ref is one (LANE, LANE) slab holding both layers:
    #   rows [0, F], cols [0, H)     : W1 with b1 as the extra row F
    #   rows [0, H], cols [H, H+O)   : W2 with b2 as the extra row H
    w = p_ref[...]

    # Hidden layer: sigmoid(x_aug @ slab) gives the hidden activations on
    # lanes [0, H); other lanes hold harmless finite values that only ever
    # multiply exactly-zero slab rows in the second pass.
    h = jnp.dot(x_ref[...], w, preferred_element_type=jnp.float32)
    h = jax.nn.sigmoid(h)

    # Force lane `hidden_dim` to 1.0 so the slab's b2 row contributes exactly b2.
    lane = jax.lax.broadcasted_iota(jnp.int32, h.shape, 1)
    h = jnp.where(lane == hidden_dim, jnp.float32(1.0), h)

    # Output layer: relu(h_aug @ slab); real results land on lanes [H, H+O).
    p = jnp.dot(h, w, preferred_element_type=jnp.float32)
    p = jnp.maximum(p, 0.0)

    # Merged output: row 0 = mu, row 1 = (sigma + 1)^2.
    row = jax.lax.broadcasted_iota(jnp.int32, p.shape, 0)
    out_ref[...] = jnp.where(row == 0, p, (p + 1.0) ** 2)


def emnet_forward(x, w1, b1, w2, b2):
    B, F = x.shape
    H = w1.shape[1]
    O = w2.shape[1]
    C = H  # column offset of the second-layer weights inside the shared slab
    assert B == 2, "tensor_split unpacking in the reference requires batch == 2"
    assert F + 1 <= LANE and H + 1 <= LANE and C + O <= LANE, (
        "single-slab layout assumes both layers fit in one 128x128 tile"
    )

    f32 = jnp.float32

    # x augmented with a ones column at lane F (folds b1), lane-padded to 128.
    x_aug = jnp.zeros((B, LANE), f32)
    x_aug = x_aug.at[:, :F].set(x.astype(f32))
    x_aug = x_aug.at[:, F].set(1.0)

    # Single packed parameter slab shared by both matmuls (one 64 KiB DMA).
    slab = jnp.zeros((LANE, LANE), f32)
    slab = slab.at[:F, :H].set(w1.astype(f32))
    slab = slab.at[F, :H].set(b1.reshape(-1).astype(f32))
    slab = slab.at[:H, C:C + O].set(w2.astype(f32))
    slab = slab.at[H, C:C + O].set(b2.reshape(-1).astype(f32))

    kernel = functools.partial(emnet_kernel, hidden_dim=H)

    out = pl.pallas_call(
        kernel,
        out_shape=jax.ShapeDtypeStruct((B, LANE), f32),
        grid=(),
        in_specs=[
            pl.BlockSpec((B, LANE), lambda: (0, 0)),
            pl.BlockSpec((LANE, LANE), lambda: (0, 0)),
        ],
        out_specs=pl.BlockSpec((B, LANE), lambda: (0, 0)),
        cost_estimate=pl.CostEstimate(
            flops=2 * 2 * B * LANE * LANE,          # two (B,128)x(128,128) matmuls
            transcendentals=B * LANE,               # sigmoid
            bytes_accessed=4 * (B * LANE + LANE * LANE + B * LANE),
        ),
    )(x_aug, slab)

    # Free XLA slices: pull the real lanes and split into the module's outputs.
    mu = out[0:1, C:C + O]
    sigma_sq = out[1:2, C:C + O]
    return mu, sigma_sq


def reference_forward(x, w1, b1, w2, b2):
    h = jax.nn.sigmoid(x @ w1 + b1)
    p = jnp.maximum(h @ w2 + b2, 0.0)
    mu = p[0:1, :]
    sigma = p[1:2, :]
    return mu, (sigma + 1.0) ** 2


if __name__ == "__main__":
    # Small shapes consistent with the module: batch=2 (forced by tensor_split
    # unpacking), features=16, hidden_dim=32, out_dim=8.
    B, F, H, O = 2, 16, 32, 8

    key = jax.random.PRNGKey(0)
    kx, kw1, kb1, kw2, kb2 = jax.random.split(key, 5)

    x = jax.random.normal(kx, (B, F), dtype=jnp.float32)
    # Deterministic parameter init (synthetic; mimics Linear weight/bias shapes).
    w1 = jax.random.normal(kw1, (F, H), dtype=jnp.float32) * 0.1
    b1 = jax.random.normal(kb1, (1, H), dtype=jnp.float32) * 0.1
    w2 = jax.random.normal(kw2, (H, O), dtype=jnp.float32) * 0.1
    b2 = jax.random.normal(kb2, (1, O), dtype=jnp.float32) * 0.1

    mu, sigma_sq = emnet_forward(x, w1, b1, w2, b2)
    jax.block_until_ready((mu, sigma_sq))

    mu_ref, sigma_sq_ref = reference_forward(x, w1, b1, w2, b2)
    assert mu.shape == (1, O) and sigma_sq.shape == (1, O)
    assert jnp.allclose(mu, mu_ref, atol=1e-5, rtol=1e-5)
    assert jnp.allclose(sigma_sq, sigma_sq_ref, atol=1e-5, rtol=1e-5)

    print("KERNEL_OK")
</pallas_src>

<mosaic_0001>
module attributes {stable_mosaic.version = 11 : i64} {
  func.func @emnet_kernel(%arg0: memref<2x128xf32, #tpu.memory_space<vmem>>, %arg1: memref<128x128xf32, #tpu.memory_space<vmem>>, %arg2: memref<2x128xf32, #tpu.memory_space<vmem>>) attributes {dimension_semantics = [], scalar_prefetch = 0 : i64, scratch_operands = 0 : i64, tpu.core_type = #tpu.core_type<tc>} {
    %c0 = arith.constant 0 : index
    %c0_0 = arith.constant 0 : index
    %0 = vector.load %arg1[%c0, %c0_0] : memref<128x128xf32, #tpu.memory_space<vmem>>, vector<128x128xf32>
    %c0_1 = arith.constant 0 : index
    %c0_2 = arith.constant 0 : index
    %1 = vector.load %arg0[%c0_1, %c0_2] : memref<2x128xf32, #tpu.memory_space<vmem>>, vector<2x128xf32>
    %cst = arith.constant dense<0.000000e+00> : vector<2x128xf32>
    %2 = tpu.matmul %1, %0, %cst {dimension_numbers = #tpu.dot_dimension_numbers<[1], [0], [0], [1], [0, 0, 1, 1], [], []>} : vector<2x128xf32>, vector<128x128xf32>, vector<2x128xf32> -> vector<2x128xf32>
    %3 = arith.negf %2 : vector<2x128xf32>
    %4 = math.exp %3 : vector<2x128xf32>
    %cst_3 = arith.constant 1.000000e+00 : f32
    %5 = vector.broadcast %cst_3 : f32 to vector<2x128xf32>
    %6 = arith.addf %5, %4 : vector<2x128xf32>
    %7 = arith.divf %5, %6 : vector<2x128xf32>
    %8 = tpu.iota {dimensions = array<i32: 1>} : vector<2x128xi32>
    %c32_i32 = arith.constant 32 : i32
    %9 = vector.broadcast %c32_i32 : i32 to vector<2x128xi32>
    %10 = arith.cmpi eq, %8, %9 : vector<2x128xi32>
    %cst_4 = arith.constant 1.000000e+00 : f32
    %11 = vector.broadcast %cst_4 : f32 to vector<2x128xf32>
    %12 = arith.select %10, %11, %7 : vector<2x128xi1>, vector<2x128xf32>
    %cst_5 = arith.constant dense<0.000000e+00> : vector<2x128xf32>
    %13 = tpu.matmul %12, %0, %cst_5 {dimension_numbers = #tpu.dot_dimension_numbers<[1], [0], [0], [1], [0, 0, 1, 1], [], []>} : vector<2x128xf32>, vector<128x128xf32>, vector<2x128xf32> -> vector<2x128xf32>
    %cst_6 = arith.constant 0.000000e+00 : f32
    %14 = vector.broadcast %cst_6 : f32 to vector<2x128xf32>
    %15 = arith.maximumf %13, %14 : vector<2x128xf32>
    %16 = tpu.iota {dimensions = array<i32: 0>} : vector<2x128xi32>
    %c0_i32 = arith.constant 0 : i32
    %17 = vector.broadcast %c0_i32 : i32 to vector<2x128xi32>
    %18 = arith.cmpi eq, %16, %17 : vector<2x128xi32>
    %cst_7 = arith.constant 1.000000e+00 : f32
    %19 = vector.broadcast %cst_7 : f32 to vector<2x128xf32>
    %20 = arith.addf %15, %19 : vector<2x128xf32>
    %21 = arith.mulf %20, %20 : vector<2x128xf32>
    %22 = arith.select %18, %15, %21 : vector<2x128xi1>, vector<2x128xf32>
    %c0_8 = arith.constant 0 : index
    %c0_9 = arith.constant 0 : index
    %23 = vector.load %arg2[%c0_8, %c0_9] : memref<2x128xf32, #tpu.memory_space<vmem>>, vector<2x128xf32>
    tpu.vector_store %arg2[%c0_8, %c0_9], %22 {strides = array<i32>} : memref<2x128xf32, #tpu.memory_space<vmem>>, vector<2x128xf32>,
    return
  }
}

</mosaic_0001>

<bundles_post_ra>
// kernel: tpu_custom_call.1
= control target key start
LH: loop header
LB: loop body
LE: loop exit
PB: predicated region body
PF: predicated region fallthrough
CT: control target
= control target key end

     0   :  { %7 = vsyncpa [#allocation3], 0  ;;  %s476_s0 = inlined_call_operand.hbm [shape: f32[2,128], index: 0, kind: input, shape index: {}]   ;;  %s477_s1 = inlined_call_operand.hbm [shape: f32[128,128], index: 1, kind: input, shape index: {}]   ;;  %s478_s2 = inlined_call_operand.hbm [shape: f32[2,128], index: 2, kind: output, shape index: {}]  }
   0x1   :  { %8 = vsyncpa [#allocation6], 0 }
   0x2   :  { %9 = vsyncpa [#allocation4], 0  ;;  %s411_s9 = smov [#allocation2]   ;;  %s412_s11 = smov [#allocation5]  }
   0x3   :  { %s16_s10 = sshll.u32 %s411_s9, 4  ;;  %s25_s12 = sshll.u32 %s412_s11, 4  ;;  %s17_s10 = int_to_ptr.vmem [resolvable:$true] %s16_s10  ;;  %s26_s12 = int_to_ptr.vmem [resolvable:$true] %s25_s12 }
   0x4   :  { %s353_s13 = scalar_lea.vmem %s17_s10, 32  ;;  %p358_p1 = scmp.lt.s32.totalorder %s17_s10, %s17_s10 }
   0x5   :  { %p354_p0 = scmp.ne.s32.totalorder %s17_s10, %s353_s13  ;;  %p359_p2 = scmp.lt.s32.totalorder %s353_s13, %s353_s13 }
   0x7   :  { %p360_p3 = por %p359_p2, %p358_p1 }
   0x9   :  { %p361_p4 = pnand %p360_p3, %p354_p0 }
   0xb   :  { %364 = shalt.err (!%p361_p4)
}
   0xc   :  { %19 = dma.hbm_to_vmem [thread:$0]  %s476_s0, 32, %s17_s10, [#allocation3]  }
   0xd   :  { %s373_s16 = scalar_lea.vmem %s26_s12, 2048  ;;  %p378_p6 = scmp.lt.s32.totalorder %s26_s12, %s26_s12 }
   0xe   :  { %p374_p5 = scmp.ne.s32.totalorder %s26_s12, %s373_s16  ;;  %p379_p7 = scmp.lt.s32.totalorder %s373_s16, %s373_s16 }
  0x10   :  { %p380_p8 = por %p379_p7, %p378_p6 }
  0x12   :  { %p381_p9 = pnand %p380_p8, %p374_p5 }
  0x14   :  { %384 = shalt.err (!%p381_p9)
}
  0x15   :  { %s413_s17 = smov 128   ;;  %s414_s18 = smov 8  }
  0x16   :  { %31 = dma.hbm_to_vmem [thread:$0]  %s477_s1, 2048, %s26_s12, [#allocation6], %s413_s17, %s413_s17, %s414_s18  }
  0x17   :  { %405 = dma.done.wait [#allocation3], 32  }
  0x18   :  { %406 = vsyncadd [#allocation3], 4294967264 }
  0x19   :  { %407 = dma.done.wait [#allocation6], 2048  }
  0x1a   :  { %408 = vsyncadd [#allocation6], 4294965248  ;;  %v415_v0 = vmov 0.0   ;;  %vm416_vm0 = vmmov 0   ;;  %v53_v1 = vld [vmem:[#allocation5 + $0x78] sm:$0xff]  ;;  %v52_v2 = vld [vmem:[#allocation5 + $0x70] sm:$0xff]  ;;  %v131_v23 = vlaneseq }
  0x1b   :  { %264 = vmatprep.subr.mxu0 %v415_v0  ;;  %296 = vmatprep.mubr.msk.f32.mxu0 %vm416_vm0, %v415_v0  ;;  %v51_v3 = vld [vmem:[#allocation5 + $0x68] sm:$0xff]  ;;  %v50_v4 = vld [vmem:[#allocation5 + $0x60] sm:$0xff]  ;;  %v49_v5 = vld [vmem:[#allocation5 + $0x58] sm:$0xff]  ;;  %s417_s0 = smov [#allocation7]  }
  0x1c   :  { %299 = vmatprep.subr.mxu1 %v415_v0  ;;  %331 = vmatprep.mubr.msk.f32.mxu1 %vm416_vm0, %v415_v0  ;;  %v48_v6 = vld [vmem:[#allocation5 + $0x50] sm:$0xff]  ;;  %v47_v7 = vld [vmem:[#allocation5 + $0x48] sm:$0xff]  ;;  %v46_v8 = vld [vmem:[#allocation5 + $0x40] sm:$0xff]  ;;  %v132_v24 = vand.u32 127, %v131_v23  ;;  %v207_v28 = vshrl.u32 %v131_v23, 7  ;;  %s219_s1 = sshll.u32 %s417_s0, 4  ;;  %s220_s1 = int_to_ptr.vmem [resolvable:$true] %s219_s1 }
  0x1d   :  { %265 = vmatpush3.msra.mxu0 %v53_v1  ;;  %300 = vmatpush3.msra.mxu1 %v53_v1  ;;  %v45_v9 = vld [vmem:[#allocation5 + $0x38] sm:$0xff]  ;;  %v44_v10 = vld [vmem:[#allocation5 + $0x30] sm:$0xff]  ;;  %v43_v11 = vld [vmem:[#allocation5 + $0x28] sm:$0xff]  ;;  %s385_s21 = scalar_lea.vmem %s220_s1, 32  ;;  %p390_p11 = scmp.lt.s32.totalorder %s220_s1, %s220_s1 }
  0x1e   :  { %266 = vmatprep.subr.mxu0 %v415_v0  ;;  %301 = vmatprep.subr.mxu1 %v415_v0  ;;  %v42_v12 = vld [vmem:[#allocation5 + $0x20] sm:$0xff]  ;;  %v41_v13 = vld [vmem:[#allocation5 + $0x18] sm:$0xff]  ;;  %v40_v14 = vld [vmem:[#allocation5 + $0x10] sm:$0xff]  ;;  %vm133_vm1 = vcmp.eq.s32.totalorder %v132_v24, 32  ;;  %vm208_vm2 = vcmp.eq.s32.totalorder %v207_v28, 0  ;;  %p386_p10 = scmp.ne.s32.totalorder %s220_s1, %s385_s21  ;;  %p391_p12 = scmp.lt.s32.totalorder %s385_s21, %s385_s21 }
  0x1f   :  { %267 = vmatpush3.msra.mxu0 %v52_v2  ;;  %302 = vmatpush3.msra.mxu1 %v52_v2  ;;  %v39_v15 = vld [vmem:[#allocation5 + $0x8] sm:$0xff]  ;;  %v38_v16 = vld [vmem:[#allocation5] sm:$0xff]  ;;  %v54_v17 = vld [vmem:[#allocation2] sm:$0x3] }
  0x20   :  { %268 = vmatprep.subr.mxu0 %v415_v0  ;;  %303 = vmatprep.subr.mxu1 %v415_v0  ;;  %p392_p13 = por %p391_p12, %p390_p11 }
  0x21   :  { %269 = vmatpush3.msra.mxu0 %v51_v3  ;;  %304 = vmatpush3.msra.mxu1 %v51_v3 }
  0x22   :  { %270 = vmatprep.subr.mxu0 %v415_v0  ;;  %305 = vmatprep.subr.mxu1 %v415_v0  ;;  %p393_p0 = pnand %p392_p13, %p386_p10 }
  0x23   :  { %271 = vmatpush3.msra.mxu0 %v50_v4  ;;  %306 = vmatpush3.msra.mxu1 %v50_v4 }
  0x24   :  { %272 = vmatprep.subr.mxu0 %v415_v0  ;;  %307 = vmatprep.subr.mxu1 %v415_v0 }
  0x25   :  { %273 = vmatpush3.msra.mxu0 %v49_v5  ;;  %308 = vmatpush3.msra.mxu1 %v49_v5 }
  0x26   :  { %274 = vmatprep.subr.mxu0 %v415_v0  ;;  %309 = vmatprep.subr.mxu1 %v415_v0 }
  0x27   :  { %275 = vmatpush3.msra.mxu0 %v48_v6  ;;  %310 = vmatpush3.msra.mxu1 %v48_v6 }
  0x28   :  { %276 = vmatprep.subr.mxu0 %v415_v0  ;;  %311 = vmatprep.subr.mxu1 %v415_v0 }
  0x29   :  { %277 = vmatpush3.msra.mxu0 %v47_v7  ;;  %312 = vmatpush3.msra.mxu1 %v47_v7 }
  0x2a   :  { %278 = vmatprep.subr.mxu0 %v415_v0  ;;  %313 = vmatprep.subr.mxu1 %v415_v0 }
  0x2b   :  { %279 = vmatpush3.msra.mxu0 %v46_v8  ;;  %314 = vmatpush3.msra.mxu1 %v46_v8 }
  0x2c   :  { %280 = vmatprep.subr.mxu0 %v415_v0  ;;  %315 = vmatprep.subr.mxu1 %v415_v0 }
  0x2d   :  { %281 = vmatpush3.msra.mxu0 %v45_v9  ;;  %316 = vmatpush3.msra.mxu1 %v45_v9 }
  0x2e   :  { %282 = vmatprep.subr.mxu0 %v415_v0  ;;  %317 = vmatprep.subr.mxu1 %v415_v0 }
  0x2f   :  { %283 = vmatpush3.msra.mxu0 %v44_v10  ;;  %318 = vmatpush3.msra.mxu1 %v44_v10 }
  0x30   :  { %284 = vmatprep.subr.mxu0 %v415_v0  ;;  %319 = vmatprep.subr.mxu1 %v415_v0 }
  0x31   :  { %285 = vmatpush3.msra.mxu0 %v43_v11  ;;  %320 = vmatpush3.msra.mxu1 %v43_v11 }
  0x32   :  { %286 = vmatprep.subr.mxu0 %v415_v0  ;;  %321 = vmatprep.subr.mxu1 %v415_v0 }
  0x33   :  { %287 = vmatpush3.msra.mxu0 %v42_v12  ;;  %322 = vmatpush3.msra.mxu1 %v42_v12 }
  0x34   :  { %288 = vmatprep.subr.mxu0 %v415_v0  ;;  %323 = vmatprep.subr.mxu1 %v415_v0 }
  0x35   :  { %289 = vmatpush3.msra.mxu0 %v41_v13  ;;  %324 = vmatpush3.msra.mxu1 %v41_v13 }
  0x36   :  { %290 = vmatprep.subr.mxu0 %v415_v0  ;;  %325 = vmatprep.subr.mxu1 %v415_v0 }
  0x37   :  { %291 = vmatpush3.msra.mxu0 %v40_v14  ;;  %326 = vmatpush3.msra.mxu1 %v40_v14 }
  0x38   :  { %292 = vmatprep.subr.mxu0 %v415_v0  ;;  %327 = vmatprep.subr.mxu1 %v415_v0 }
  0x39   :  { %293 = vmatpush3.msra.mxu0 %v39_v15  ;;  %328 = vmatpush3.msra.mxu1 %v39_v15 }
  0x3a   :  { %294 = vmatprep.subr.mxu0 %v415_v0  ;;  %329 = vmatprep.subr.mxu1 %v415_v0 }
  0x3b   :  { %295 = vmatpush3.msra.mxu0 %v38_v16  ;;  %330 = vmatpush3.msra.mxu1 %v38_v16 }
  0x3c   :  { %297 = vmatmul.mubr.f32.vlgmr.msra.gmra.mxu0 %v54_v17 }
  0xfc   :  { %v121_v18 = vpop.f32.mrf.mxu0 }
  0xfd   :  { %v229_v19 = vmul.f32 -1.442695, %v121_v18 }
  0xfe   :  { %v298_v20 = vpop.f32.mrf.mxu0 }
  0xff   :  { %341 = vpow2.f32 %v229_v19 }
 0x10c   :  { %v342_v21 = vpop.eup %341 }
 0x10d   :  { %v128_v22 = vadd.f32 1.0, %v342_v21 }
 0x10f   :  { %343 = vrcp.f32 %v128_v22 }
 0x11c   :  { %v344_v25 = vpop.eup %343 }
 0x11d   :  { %v134_v26 = vsel %vm133_vm1, 1.0, %v344_v25 }
 0x11e   :  { %332 = vmatmul.mubr.f32.vlgmr.msra.gmra.mxu1 %v134_v26 }
 0x1de   :  { %v201_v27 = vpop.f32.mrf.mxu1 }
 0x1df   :  { %v205_v29 = vmax.f32 %v201_v27, 0.0 }
 0x1e0   :  { %v333_v30 = vpop.f32.mrf.mxu1 }
 0x1e1   :  { %v209_v31 = vadd.f32 1.0, %v205_v29 }
 0x1e3   :  { %v210_v32 = vmul.f32 %v209_v31, %v209_v31 }
 0x1e5   :  { %v211_v33 = vsel %vm208_vm2, %v205_v29, %v210_v32 }
 0x1e6   :  { %212 = vst [vmem:[#allocation7] sm:$0x3] %v211_v33 }
 0x1e7   :  { %396 = shalt.err (!%p393_p0)
}
 0x1e8   :  { %222 = dma.vmem_to_hbm [thread:$0]  %s220_s1, 32, %s478_s2, [#allocation4]  }
 0x1e9   :  { %409 = dma.done.wait [#allocation4], 32  }
 0x1ea   :  { %410 = vsyncadd [#allocation4], 4294967264 }
 0x1eb   :  { %226 = vsyncpa [#allocation3], 1 }
 0x1ec   :  { %227 = vsyncpa [#allocation6], 1 }
 0x1ed   :  { %228 = vsyncpa [#allocation4], 1 }

</bundles_post_ra>
